<compile_context>
chip_gen: v5e
topology: v5e:2x2
jax: 0.10.0
libtpu: 0.0.40
codegen_flags: <defaults>
</compile_context>

<pallas_src>
import functools

import jax
import jax.numpy as jnp
from jax.experimental import pallas as pl
from jax.experimental.pallas import tpu as pltpu

LANE = 128  # f32/bf16 lane width


def _round_up(n, m):
    return ((n + m - 1) // m) * m


def rnn_kernel(x_ref, wih_ref, whh_ref, bias_ref, wfc_ref, bfc_ref, out_ref,
               *, seq_len):
    """Whole forward pass in one invocation (everything resident in VMEM).

    x_ref   : (S, B, D)   bf16  time-major input (real, unpadded D and B)
    wih_ref : (D, Hp)     bf16  W_ih^T, hidden dim zero-padded to Hp
    whh_ref : (Hp, Hp)    bf16  W_hh^T
    bias_ref: (1, Hp)     f32   b_ih + b_hh
    wfc_ref : (Hp, Op)    f32   W_fc^T
    bfc_ref : (1, Op)     f32   b_fc
    out_ref : (B, Op)     f32
    """
    wih = wih_ref[...]            # (D, Hp)
    whh = whh_ref[...]            # (Hp, Hp), resident in vregs across the loop
    bias = bias_ref[...]          # (1, Hp), loaded once

    B = x_ref.shape[1]
    Hp = whh_ref.shape[1]
    cdt = whh.dtype               # MXU operand dtype (bf16)

    h = jnp.zeros((B, Hp), jnp.float32)

    # Static unroll: all indices are compile-time constants.  The x_t input
    # projections do not depend on h, so the scheduler can issue them ahead of
    # / under the serial tanh(h @ W_hh) dependency chain.
    # TODO(synk): for long sequences, pin W_hh in the MXU weight registers via
    # pltpu.matmul_push_rhs/matmul_acc_lhs/matmul_pop (must be gated per chip:
    # MRF pop on v5e/v6e vs addressed MRB on v7x); relying on Mosaic here.
    for t in range(seq_len):
        xw_t = jnp.dot(x_ref[t], wih, preferred_element_type=jnp.float32) + bias
        hh_t = jnp.dot(h.astype(cdt), whh, preferred_element_type=jnp.float32)
        h = jnp.tanh(xw_t + hh_t)

    out = (jnp.dot(h, wfc_ref[...], preferred_element_type=jnp.float32)
           + bfc_ref[...])
    out_ref[...] = out.astype(out_ref.dtype)


def prepare_params(params, compute_dtype=jnp.bfloat16):
    """One-time padding/transpose of the weights (NOT on the per-call path).

    Zero padding of the hidden/output dims is mathematically inert: padded h
    components stay exactly 0 through the recurrence and the fc layer.
    """
    w_ih, w_hh, b_ih, b_hh, w_fc, b_fc = params
    H, D = w_ih.shape
    O = w_fc.shape[0]
    Hp = _round_up(H, LANE)
    Op = _round_up(O, LANE)
    f32 = jnp.float32

    wih_p = jnp.zeros((D, Hp), compute_dtype).at[:, :H].set(
        w_ih.T.astype(compute_dtype))
    whh_p = jnp.zeros((Hp, Hp), compute_dtype).at[:H, :H].set(
        w_hh.T.astype(compute_dtype))
    bias_p = jnp.zeros((1, Hp), f32).at[0, :H].set((b_ih + b_hh).astype(f32))
    wfc_p = jnp.zeros((Hp, Op), f32).at[:H, :O].set(w_fc.T.astype(f32))
    bfc_p = jnp.zeros((1, Op), f32).at[0, :O].set(b_fc.astype(f32))
    return wih_p, whh_p, bias_p, wfc_p, bfc_p


@functools.partial(jax.jit, static_argnames=("out_dim",))
def rnn_model_forward(x, wih_p, whh_p, bias_p, wfc_p, bfc_p, *, out_dim):
    """x: (B, S, D) batch-first, like the PyTorch module. Returns (B, out_dim)."""
    B, S, D = x.shape
    Hp = whh_p.shape[0]
    Op = wfc_p.shape[1]

    # Per-call work on x only: time-major layout + bf16 MXU operand dtype.
    # No D/B padding (full-array BlockSpecs are legal at unaligned shapes).
    x_tm = jnp.transpose(x, (1, 0, 2)).astype(wih_p.dtype)   # (S, B, D)

    flops = 2 * S * B * Hp * (D + Hp) + 2 * B * Hp * Op
    bytes_accessed = (
        x_tm.size * x_tm.dtype.itemsize
        + wih_p.size * wih_p.dtype.itemsize
        + whh_p.size * whh_p.dtype.itemsize
        + (bias_p.size + wfc_p.size + bfc_p.size + B * Op) * 4)

    out_p = pl.pallas_call(
        functools.partial(rnn_kernel, seq_len=S),
        out_shape=jax.ShapeDtypeStruct((B, Op), jnp.float32),
        in_specs=[pl.BlockSpec(memory_space=pltpu.MemorySpace.VMEM)] * 6,
        out_specs=pl.BlockSpec(memory_space=pltpu.MemorySpace.VMEM),
        cost_estimate=pl.CostEstimate(
            flops=flops,
            transcendentals=S * B * Hp,
            bytes_accessed=bytes_accessed),
    )(x_tm, wih_p, whh_p, bias_p, wfc_p, bfc_p)

    return out_p[:, :out_dim].astype(x.dtype)


def init_params(key, input_dim=4, hidden_dim=32, output_dim=1):
    """Deterministic synthetic init matching nn.RNN / nn.Linear shapes."""
    ks = jax.random.split(key, 6)
    bound = 1.0 / jnp.sqrt(hidden_dim)
    w_ih = jax.random.uniform(ks[0], (hidden_dim, input_dim),
                              jnp.float32, -bound, bound)
    w_hh = jax.random.uniform(ks[1], (hidden_dim, hidden_dim),
                              jnp.float32, -bound, bound)
    b_ih = jax.random.uniform(ks[2], (hidden_dim,), jnp.float32, -bound, bound)
    b_hh = jax.random.uniform(ks[3], (hidden_dim,), jnp.float32, -bound, bound)
    w_fc = jax.random.uniform(ks[4], (output_dim, hidden_dim),
                              jnp.float32, -bound, bound)
    b_fc = jax.random.uniform(ks[5], (output_dim,), jnp.float32, -bound, bound)
    return (w_ih, w_hh, b_ih, b_hh, w_fc, b_fc)


def reference_forward(x, params):
    """Pure-JAX full-f32 reference of the PyTorch forward."""
    w_ih, w_hh, b_ih, b_hh, w_fc, b_fc = params
    B, S, D = x.shape
    H = w_ih.shape[0]
    h = jnp.zeros((B, H), jnp.float32)
    for t in range(S):
        h = jnp.tanh(x[:, t, :] @ w_ih.T + b_ih + h @ w_hh.T + b_hh)
    return h @ w_fc.T + b_fc


def reference_forward_matched(x, params, compute_dtype=jnp.bfloat16):
    """Pure-JAX reference mimicking the kernel's dtype choices (bf16 MXU
    operands, f32 accumulate/bias/tanh/fc) for a tight numerical check."""
    w_ih, w_hh, b_ih, b_hh, w_fc, b_fc = params
    B, S, D = x.shape
    H = w_ih.shape[0]
    f32 = jnp.float32
    xq = x.astype(compute_dtype)
    wih = w_ih.T.astype(compute_dtype)
    whh = w_hh.T.astype(compute_dtype)
    bias = (b_ih + b_hh).astype(f32)
    h = jnp.zeros((B, H), f32)
    for t in range(S):
        xw = jnp.dot(xq[:, t, :], wih, preferred_element_type=f32) + bias
        hh = jnp.dot(h.astype(compute_dtype), whh, preferred_element_type=f32)
        h = jnp.tanh(xw + hh)
    return (jnp.dot(h, w_fc.T.astype(f32), preferred_element_type=f32)
            + b_fc.astype(f32))


if __name__ == "__main__":
    key = jax.random.PRNGKey(0)
    k_x, k_p = jax.random.split(key)

    B, S, D, H, O = 2, 8, 4, 32, 1
    x = jax.random.normal(k_x, (B, S, D), jnp.float32)
    params = init_params(k_p, input_dim=D, hidden_dim=H, output_dim=O)

    prepared = prepare_params(params)            # once, off the per-call path
    out = rnn_model_forward(x, *prepared, out_dim=O)
    out = jax.block_until_ready(out)
    assert out.shape == (B, O)

    # Tight check: kernel vs a pure-JAX reference with identical dtype choices.
    ref_matched = reference_forward_matched(x, params)
    assert jnp.allclose(out, ref_matched, atol=1e-2, rtol=1e-2)

    # Semantic check vs the full-f32 PyTorch-equivalent forward; tolerance set
    # by the bf16 quantization of the MXU operands (weights/inputs/hidden).
    ref_f32 = reference_forward(x, params)
    assert jnp.allclose(out, ref_f32, atol=6e-2, rtol=6e-2)

    print("KERNEL_OK")
</pallas_src>

<mosaic_0001>
module attributes {stable_mosaic.version = 11 : i64} {
  func.func @rnn_kernel(%arg0: memref<8x2x4xbf16, #tpu.memory_space<vmem>>, %arg1: memref<4x128xbf16, #tpu.memory_space<vmem>>, %arg2: memref<128x128xbf16, #tpu.memory_space<vmem>>, %arg3: memref<1x128xf32, #tpu.memory_space<vmem>>, %arg4: memref<128x128xf32, #tpu.memory_space<vmem>>, %arg5: memref<1x128xf32, #tpu.memory_space<vmem>>, %arg6: memref<2x128xf32, #tpu.memory_space<vmem>>) attributes {dimension_semantics = [], scalar_prefetch = 0 : i64, scratch_operands = 0 : i64, tpu.core_type = #tpu.core_type<tc>} {
    %c0 = arith.constant 0 : index
    %c0_0 = arith.constant 0 : index
    %0 = vector.load %arg1[%c0, %c0_0] : memref<4x128xbf16, #tpu.memory_space<vmem>>, vector<4x128xbf16>
    %c0_1 = arith.constant 0 : index
    %c0_2 = arith.constant 0 : index
    %1 = vector.load %arg2[%c0_1, %c0_2] : memref<128x128xbf16, #tpu.memory_space<vmem>>, vector<128x128xbf16>
    %c0_3 = arith.constant 0 : index
    %c0_4 = arith.constant 0 : index
    %2 = vector.load %arg3[%c0_3, %c0_4] : memref<1x128xf32, #tpu.memory_space<vmem>>, vector<1x128xf32>
    %cst = arith.constant 0.000000e+00 : f32
    %3 = vector.broadcast %cst : f32 to vector<2x128xf32>
    %c0_5 = arith.constant 0 : index
    %c0_6 = arith.constant 0 : index
    %c0_7 = arith.constant 0 : index
    %4 = vector.load %arg0[%c0_5, %c0_6, %c0_7] : memref<8x2x4xbf16, #tpu.memory_space<vmem>>, vector<1x2x4xbf16>
    %5 = vector.shape_cast %4 : vector<1x2x4xbf16> to vector<2x4xbf16>
    %cst_8 = arith.constant dense<0.000000e+00> : vector<2x128xf32>
    %6 = tpu.matmul %5, %0, %cst_8 {dimension_numbers = #tpu.dot_dimension_numbers<[1], [0], [0], [1], [0, 0, 1, 1], [], []>} : vector<2x4xbf16>, vector<4x128xbf16>, vector<2x128xf32> -> vector<2x128xf32>
    %7 = vector.broadcast %2 : vector<1x128xf32> to vector<2x128xf32>
    %8 = arith.addf %6, %7 : vector<2x128xf32>
    %9 = arith.truncf %3 : vector<2x128xf32> to vector<2x128xbf16>
    %cst_9 = arith.constant dense<0.000000e+00> : vector<2x128xf32>
    %10 = tpu.matmul %9, %1, %cst_9 {dimension_numbers = #tpu.dot_dimension_numbers<[1], [0], [0], [1], [0, 0, 1, 1], [], []>} : vector<2x128xbf16>, vector<128x128xbf16>, vector<2x128xf32> -> vector<2x128xf32>
    %11 = arith.addf %8, %10 : vector<2x128xf32>
    %12 = math.tanh %11 : vector<2x128xf32>
    %c1 = arith.constant 1 : index
    %c0_10 = arith.constant 0 : index
    %c0_11 = arith.constant 0 : index
    %13 = vector.load %arg0[%c1, %c0_10, %c0_11] : memref<8x2x4xbf16, #tpu.memory_space<vmem>>, vector<1x2x4xbf16>
    %14 = vector.shape_cast %13 : vector<1x2x4xbf16> to vector<2x4xbf16>
    %cst_12 = arith.constant dense<0.000000e+00> : vector<2x128xf32>
    %15 = tpu.matmul %14, %0, %cst_12 {dimension_numbers = #tpu.dot_dimension_numbers<[1], [0], [0], [1], [0, 0, 1, 1], [], []>} : vector<2x4xbf16>, vector<4x128xbf16>, vector<2x128xf32> -> vector<2x128xf32>
    %16 = vector.broadcast %2 : vector<1x128xf32> to vector<2x128xf32>
    %17 = arith.addf %15, %16 : vector<2x128xf32>
    %18 = arith.truncf %12 : vector<2x128xf32> to vector<2x128xbf16>
    %cst_13 = arith.constant dense<0.000000e+00> : vector<2x128xf32>
    %19 = tpu.matmul %18, %1, %cst_13 {dimension_numbers = #tpu.dot_dimension_numbers<[1], [0], [0], [1], [0, 0, 1, 1], [], []>} : vector<2x128xbf16>, vector<128x128xbf16>, vector<2x128xf32> -> vector<2x128xf32>
    %20 = arith.addf %17, %19 : vector<2x128xf32>
    %21 = math.tanh %20 : vector<2x128xf32>
    %c2 = arith.constant 2 : index
    %c0_14 = arith.constant 0 : index
    %c0_15 = arith.constant 0 : index
    %22 = vector.load %arg0[%c2, %c0_14, %c0_15] : memref<8x2x4xbf16, #tpu.memory_space<vmem>>, vector<1x2x4xbf16>
    %23 = vector.shape_cast %22 : vector<1x2x4xbf16> to vector<2x4xbf16>
    %cst_16 = arith.constant dense<0.000000e+00> : vector<2x128xf32>
    %24 = tpu.matmul %23, %0, %cst_16 {dimension_numbers = #tpu.dot_dimension_numbers<[1], [0], [0], [1], [0, 0, 1, 1], [], []>} : vector<2x4xbf16>, vector<4x128xbf16>, vector<2x128xf32> -> vector<2x128xf32>
    %25 = vector.broadcast %2 : vector<1x128xf32> to vector<2x128xf32>
    %26 = arith.addf %24, %25 : vector<2x128xf32>
    %27 = arith.truncf %21 : vector<2x128xf32> to vector<2x128xbf16>
    %cst_17 = arith.constant dense<0.000000e+00> : vector<2x128xf32>
    %28 = tpu.matmul %27, %1, %cst_17 {dimension_numbers = #tpu.dot_dimension_numbers<[1], [0], [0], [1], [0, 0, 1, 1], [], []>} : vector<2x128xbf16>, vector<128x128xbf16>, vector<2x128xf32> -> vector<2x128xf32>
    %29 = arith.addf %26, %28 : vector<2x128xf32>
    %30 = math.tanh %29 : vector<2x128xf32>
    %c3 = arith.constant 3 : index
    %c0_18 = arith.constant 0 : index
    %c0_19 = arith.constant 0 : index
    %31 = vector.load %arg0[%c3, %c0_18, %c0_19] : memref<8x2x4xbf16, #tpu.memory_space<vmem>>, vector<1x2x4xbf16>
    %32 = vector.shape_cast %31 : vector<1x2x4xbf16> to vector<2x4xbf16>
    %cst_20 = arith.constant dense<0.000000e+00> : vector<2x128xf32>
    %33 = tpu.matmul %32, %0, %cst_20 {dimension_numbers = #tpu.dot_dimension_numbers<[1], [0], [0], [1], [0, 0, 1, 1], [], []>} : vector<2x4xbf16>, vector<4x128xbf16>, vector<2x128xf32> -> vector<2x128xf32>
    %34 = vector.broadcast %2 : vector<1x128xf32> to vector<2x128xf32>
    %35 = arith.addf %33, %34 : vector<2x128xf32>
    %36 = arith.truncf %30 : vector<2x128xf32> to vector<2x128xbf16>
    %cst_21 = arith.constant dense<0.000000e+00> : vector<2x128xf32>
    %37 = tpu.matmul %36, %1, %cst_21 {dimension_numbers = #tpu.dot_dimension_numbers<[1], [0], [0], [1], [0, 0, 1, 1], [], []>} : vector<2x128xbf16>, vector<128x128xbf16>, vector<2x128xf32> -> vector<2x128xf32>
    %38 = arith.addf %35, %37 : vector<2x128xf32>
    %39 = math.tanh %38 : vector<2x128xf32>
    %c4 = arith.constant 4 : index
    %c0_22 = arith.constant 0 : index
    %c0_23 = arith.constant 0 : index
    %40 = vector.load %arg0[%c4, %c0_22, %c0_23] : memref<8x2x4xbf16, #tpu.memory_space<vmem>>, vector<1x2x4xbf16>
    %41 = vector.shape_cast %40 : vector<1x2x4xbf16> to vector<2x4xbf16>
    %cst_24 = arith.constant dense<0.000000e+00> : vector<2x128xf32>
    %42 = tpu.matmul %41, %0, %cst_24 {dimension_numbers = #tpu.dot_dimension_numbers<[1], [0], [0], [1], [0, 0, 1, 1], [], []>} : vector<2x4xbf16>, vector<4x128xbf16>, vector<2x128xf32> -> vector<2x128xf32>
    %43 = vector.broadcast %2 : vector<1x128xf32> to vector<2x128xf32>
    %44 = arith.addf %42, %43 : vector<2x128xf32>
    %45 = arith.truncf %39 : vector<2x128xf32> to vector<2x128xbf16>
    %cst_25 = arith.constant dense<0.000000e+00> : vector<2x128xf32>
    %46 = tpu.matmul %45, %1, %cst_25 {dimension_numbers = #tpu.dot_dimension_numbers<[1], [0], [0], [1], [0, 0, 1, 1], [], []>} : vector<2x128xbf16>, vector<128x128xbf16>, vector<2x128xf32> -> vector<2x128xf32>
    %47 = arith.addf %44, %46 : vector<2x128xf32>
    %48 = math.tanh %47 : vector<2x128xf32>
    %c5 = arith.constant 5 : index
    %c0_26 = arith.constant 0 : index
    %c0_27 = arith.constant 0 : index
    %49 = vector.load %arg0[%c5, %c0_26, %c0_27] : memref<8x2x4xbf16, #tpu.memory_space<vmem>>, vector<1x2x4xbf16>
    %50 = vector.shape_cast %49 : vector<1x2x4xbf16> to vector<2x4xbf16>
    %cst_28 = arith.constant dense<0.000000e+00> : vector<2x128xf32>
    %51 = tpu.matmul %50, %0, %cst_28 {dimension_numbers = #tpu.dot_dimension_numbers<[1], [0], [0], [1], [0, 0, 1, 1], [], []>} : vector<2x4xbf16>, vector<4x128xbf16>, vector<2x128xf32> -> vector<2x128xf32>
    %52 = vector.broadcast %2 : vector<1x128xf32> to vector<2x128xf32>
    %53 = arith.addf %51, %52 : vector<2x128xf32>
    %54 = arith.truncf %48 : vector<2x128xf32> to vector<2x128xbf16>
    %cst_29 = arith.constant dense<0.000000e+00> : vector<2x128xf32>
    %55 = tpu.matmul %54, %1, %cst_29 {dimension_numbers = #tpu.dot_dimension_numbers<[1], [0], [0], [1], [0, 0, 1, 1], [], []>} : vector<2x128xbf16>, vector<128x128xbf16>, vector<2x128xf32> -> vector<2x128xf32>
    %56 = arith.addf %53, %55 : vector<2x128xf32>
    %57 = math.tanh %56 : vector<2x128xf32>
    %c6 = arith.constant 6 : index
    %c0_30 = arith.constant 0 : index
    %c0_31 = arith.constant 0 : index
    %58 = vector.load %arg0[%c6, %c0_30, %c0_31] : memref<8x2x4xbf16, #tpu.memory_space<vmem>>, vector<1x2x4xbf16>
    %59 = vector.shape_cast %58 : vector<1x2x4xbf16> to vector<2x4xbf16>
    %cst_32 = arith.constant dense<0.000000e+00> : vector<2x128xf32>
    %60 = tpu.matmul %59, %0, %cst_32 {dimension_numbers = #tpu.dot_dimension_numbers<[1], [0], [0], [1], [0, 0, 1, 1], [], []>} : vector<2x4xbf16>, vector<4x128xbf16>, vector<2x128xf32> -> vector<2x128xf32>
    %61 = vector.broadcast %2 : vector<1x128xf32> to vector<2x128xf32>
    %62 = arith.addf %60, %61 : vector<2x128xf32>
    %63 = arith.truncf %57 : vector<2x128xf32> to vector<2x128xbf16>
    %cst_33 = arith.constant dense<0.000000e+00> : vector<2x128xf32>
    %64 = tpu.matmul %63, %1, %cst_33 {dimension_numbers = #tpu.dot_dimension_numbers<[1], [0], [0], [1], [0, 0, 1, 1], [], []>} : vector<2x128xbf16>, vector<128x128xbf16>, vector<2x128xf32> -> vector<2x128xf32>
    %65 = arith.addf %62, %64 : vector<2x128xf32>
    %66 = math.tanh %65 : vector<2x128xf32>
    %c7 = arith.constant 7 : index
    %c0_34 = arith.constant 0 : index
    %c0_35 = arith.constant 0 : index
    %67 = vector.load %arg0[%c7, %c0_34, %c0_35] : memref<8x2x4xbf16, #tpu.memory_space<vmem>>, vector<1x2x4xbf16>
    %68 = vector.shape_cast %67 : vector<1x2x4xbf16> to vector<2x4xbf16>
    %cst_36 = arith.constant dense<0.000000e+00> : vector<2x128xf32>
    %69 = tpu.matmul %68, %0, %cst_36 {dimension_numbers = #tpu.dot_dimension_numbers<[1], [0], [0], [1], [0, 0, 1, 1], [], []>} : vector<2x4xbf16>, vector<4x128xbf16>, vector<2x128xf32> -> vector<2x128xf32>
    %70 = vector.broadcast %2 : vector<1x128xf32> to vector<2x128xf32>
    %71 = arith.addf %69, %70 : vector<2x128xf32>
    %72 = arith.truncf %66 : vector<2x128xf32> to vector<2x128xbf16>
    %cst_37 = arith.constant dense<0.000000e+00> : vector<2x128xf32>
    %73 = tpu.matmul %72, %1, %cst_37 {dimension_numbers = #tpu.dot_dimension_numbers<[1], [0], [0], [1], [0, 0, 1, 1], [], []>} : vector<2x128xbf16>, vector<128x128xbf16>, vector<2x128xf32> -> vector<2x128xf32>
    %74 = arith.addf %71, %73 : vector<2x128xf32>
    %75 = math.tanh %74 : vector<2x128xf32>
    %c0_38 = arith.constant 0 : index
    %c0_39 = arith.constant 0 : index
    %76 = vector.load %arg4[%c0_38, %c0_39] : memref<128x128xf32, #tpu.memory_space<vmem>>, vector<128x128xf32>
    %cst_40 = arith.constant dense<0.000000e+00> : vector<2x128xf32>
    %77 = tpu.matmul %75, %76, %cst_40 {dimension_numbers = #tpu.dot_dimension_numbers<[1], [0], [0], [1], [0, 0, 1, 1], [], []>} : vector<2x128xf32>, vector<128x128xf32>, vector<2x128xf32> -> vector<2x128xf32>
    %c0_41 = arith.constant 0 : index
    %c0_42 = arith.constant 0 : index
    %78 = vector.load %arg5[%c0_41, %c0_42] : memref<1x128xf32, #tpu.memory_space<vmem>>, vector<1x128xf32>
    %79 = vector.broadcast %78 : vector<1x128xf32> to vector<2x128xf32>
    %80 = arith.addf %77, %79 : vector<2x128xf32>
    %c0_43 = arith.constant 0 : index
    %c0_44 = arith.constant 0 : index
    %81 = vector.load %arg6[%c0_43, %c0_44] : memref<2x128xf32, #tpu.memory_space<vmem>>, vector<2x128xf32>
    tpu.vector_store %arg6[%c0_43, %c0_44], %80 {strides = array<i32>} : memref<2x128xf32, #tpu.memory_space<vmem>>, vector<2x128xf32>,
    return
  }
}

</mosaic_0001>

<bundles_post_ra>
// kernel: rnn_model_forward.1
= control target key start
LH: loop header
LB: loop body
LE: loop exit
PB: predicated region body
PF: predicated region fallthrough
CT: control target
= control target key end

     0   :  { %11 = vsyncpa [#allocation3], 0  ;;  %s771_s0 = inlined_call_operand.vmem [shape: bf16[8,2,4], index: 0, kind: input, shape index: {}]   ;;  %s772_s1 = inlined_call_operand.vmem [shape: bf16[4,128], index: 1, kind: input, shape index: {}]   ;;  %s773_s2 = inlined_call_operand.hbm [shape: bf16[128,128], index: 2, kind: input, shape index: {}]   ;;  %s774_s3 = inlined_call_operand.vmem [shape: f32[1,128], index: 3, kind: input, shape index: {}]   ;;  %s775_s4 = inlined_call_operand.hbm [shape: f32[128,128], index: 4, kind: input, shape index: {}]   ;;  %s776_s5 = inlined_call_operand.vmem [shape: f32[1,128], index: 5, kind: input, shape index: {}]   ;;  %s777_s6 = inlined_call_operand.vmem [shape: f32[2,128], index: 6, kind: output, shape index: {}]  }
   0x1   :  { %s21_s23 = sshll.u32 %s773_s2, 4  ;;  %s22_s23 = int_to_ptr.hbm [resolvable:$true] %s21_s23 }
   0x2   :  { %12 = vsyncpa [#allocation5], 0  ;;  %s579_s24 = smov [#allocation2]   ;;  %s36_s28 = sshll.u32 %s775_s4, 4  ;;  %s37_s28 = int_to_ptr.hbm [resolvable:$true] %s36_s28 }
   0x3   :  { %s23_s25 = sshll.u32 %s579_s24, 4  ;;  %s580_s29 = smov 64   ;;  %s24_s25 = int_to_ptr.vmem [resolvable:$true] %s23_s25 }
   0x4   :  { %s581_s30 = smov 4   ;;  %s582_s7 = smov [#allocation4]  }
   0x5   :  { %29 = dma.hbm_to_vmem [thread:$0]  %s22_s23, 1024, %s24_s25, [#allocation3], %s580_s29, %s580_s29, %s581_s30  }
   0x6   :  { %s38_s8 = sshll.u32 %s582_s7, 4  ;;  %s583_s9 = smov 128   ;;  %s39_s8 = int_to_ptr.vmem [resolvable:$true] %s38_s8 }
   0x7   :  { %s584_s10 = smov 8  }
   0x8   :  { %44 = dma.hbm_to_vmem [thread:$0]  %s37_s28, 2048, %s39_s8, [#allocation5], %s583_s9, %s583_s9, %s584_s10  }
   0x9   :  { %575 = dma.done.wait [#allocation3], 1024  }
   0xa   :  { %576 = vsyncadd [#allocation3], 4294966272 }
   0xb   :  { %577 = dma.done.wait [#allocation5], 2048  }
   0xc   :  { %578 = vsyncadd [#allocation5], 4294965248  ;;  %vm82_vm0 = vcmask 1041408   ;;  %v627_v0 = vld [vmem:[#allocation2 + $0x38] sm:$0xff]  ;;  %v56_v1 = vld [vmem:[%s772_s1] sm:$0x3] }
   0xd   :  { %147 = vmatpush.bf16.msra.mxu1 %v627_v0  ;;  %v633_v2 = vld [vmem:[#allocation2 + $0x30] sm:$0xff]  ;;  %v635_v3 = vsel %vm82_vm0, %v56_v1, 0  ;;  %v74_v4 = vld [vmem:[%s771_s0] sm:$0x1]  ;;  %vm78_vm1 = vcmask 31744   ;;  %v646_v5 = vld [vmem:[#allocation2 + $0x28] sm:$0xff] }
   0xe   :  { %93 = vmatpush.bf16.msra.mxu3 %v635_v3  ;;  %174 = vmatpush.bf16.msra.mxu2 %v635_v3  ;;  %v653_v6 = vld [vmem:[#allocation2 + $0x20] sm:$0xff]  ;;  %v658_v7 = vld [vmem:[#allocation2 + $0x18] sm:$0xff]  ;;  %v663_v8 = vld [vmem:[#allocation2 + $0x10] sm:$0xff]  ;;  %v585_v11 = vmov 0  }
   0xf   :  { %208 = vmatpush.bf16.msra.mxu0 %v635_v3  ;;  %v668_v9 = vld [vmem:[#allocation2 + $0x8] sm:$0xff]  ;;  %v673_v10 = vld [vmem:[#allocation2] sm:$0xff] }
  0x10   :  { %v480_v12 = vld [vmem:[%s771_s0 + $0x1] sm:$0x1]  ;;  %v712_v15 = vld [vmem:[%s774_s3] ss:$0 sm:$0xff]  ;;  %v482_v24 = vld [vmem:[%s771_s0 + $0x2] sm:$0x1] }
  0x11   :  { %148 = vmatpush.bf16.msra.mxu1 %v633_v2  ;;  %447 = vmatmul.msk.bf16.vlgmr.msra.gmra.mxu3 %vm78_vm1, %v74_v4  ;;  %v484_v33 = vld [vmem:[%s771_s0 + $0x3] sm:$0x1]  ;;  %v486_v34 = vld [vmem:[%s771_s0 + $0x4] sm:$0x1]  ;;  %v488_v51 = vld [vmem:[%s771_s0 + $0x5] sm:$0x1] }
  0x12   :  { %181 = vmatpush.bf16.msrb.mxu3 %v627_v0  ;;  %215 = vmatpush.bf16.msrb.mxu2 %v627_v0  ;;  %v490_v58 = vld [vmem:[%s771_s0 + $0x6] sm:$0x1] }
  0x13   :  { %242 = vmatpush.bf16.msrb.mxu0 %v635_v3  ;;  %481 = vmatmul.msk.bf16.vlgmr.msra.gmra.mxu2 %vm78_vm1, %v480_v12 }
  0x14   :  { %483 = vmatmul.msk.bf16.vlgmr.msra.gmra.mxu0 %vm78_vm1, %v482_v24 }
  0x15   :  { %149 = vmatpush.bf16.msra.mxu1 %v646_v5 }
  0x16   :  { %182 = vmatpush.bf16.msrb.mxu3 %v633_v2  ;;  %216 = vmatpush.bf16.msrb.mxu2 %v633_v2 }
  0x17   :  { %276 = vmatpush.bf16.msra.mxu0 %v635_v3 }
  0x19   :  { %150 = vmatpush.bf16.msra.mxu1 %v653_v6 }
  0x1a   :  { %183 = vmatpush.bf16.msrb.mxu3 %v646_v5  ;;  %217 = vmatpush.bf16.msrb.mxu2 %v646_v5 }
  0x1d   :  { %151 = vmatpush.bf16.msra.mxu1 %v658_v7 }
  0x1e   :  { %184 = vmatpush.bf16.msrb.mxu3 %v653_v6  ;;  %218 = vmatpush.bf16.msrb.mxu2 %v653_v6 }
  0x21   :  { %152 = vmatpush.bf16.msra.mxu1 %v663_v8 }
  0x22   :  { %185 = vmatpush.bf16.msrb.mxu3 %v658_v7  ;;  %219 = vmatpush.bf16.msrb.mxu2 %v658_v7 }
  0x24   :  { %485 = vmatmul.msk.bf16.vlgmr.msrb.gmra.mxu0 %vm78_vm1, %v484_v33 }
  0x25   :  { %153 = vmatpush.bf16.msra.mxu1 %v668_v9  ;;  %283 = vmatpush.bf16.msrb.mxu0 %v627_v0 }
  0x26   :  { %186 = vmatpush.bf16.msrb.mxu3 %v663_v8  ;;  %220 = vmatpush.bf16.msrb.mxu2 %v663_v8 }
  0x29   :  { %154 = vmatpush.bf16.msra.mxu1 %v673_v10  ;;  %284 = vmatpush.bf16.msrb.mxu0 %v633_v2 }
  0x2a   :  { %187 = vmatpush.bf16.msrb.mxu3 %v668_v9  ;;  %221 = vmatpush.bf16.msrb.mxu2 %v668_v9 }
  0x2c   :  { %155 = vmatmul.bf16.vlgmr.msra.gmra.mxu1 %v585_v11  ;;  %v410_v11 = vld [vmem:[#allocation4 + $0x50] sm:$0xff] }
  0x2d   :  { %249 = vmatpush.bf16.msrb.mxu1 %v627_v0  ;;  %285 = vmatpush.bf16.msrb.mxu0 %v646_v5 }
  0x2e   :  { %188 = vmatpush.bf16.msrb.mxu3 %v673_v10  ;;  %222 = vmatpush.bf16.msrb.mxu2 %v673_v10 }
  0x31   :  { %250 = vmatpush.bf16.msrb.mxu1 %v633_v2  ;;  %286 = vmatpush.bf16.msrb.mxu0 %v653_v6 }
  0x32   :  { %317 = vmatpush.bf16.msra.mxu3 %v627_v0  ;;  %310 = vmatpush.bf16.msra.mxu2 %v635_v3 }
  0x34   :  { %487 = vmatmul.msk.bf16.vlgmr.msra.gmra.mxu0 %vm78_vm1, %v486_v34 }
  0x35   :  { %251 = vmatpush.bf16.msrb.mxu1 %v646_v5  ;;  %287 = vmatpush.bf16.msrb.mxu0 %v658_v7 }
  0x36   :  { %318 = vmatpush.bf16.msra.mxu3 %v633_v2 }
  0x39   :  { %252 = vmatpush.bf16.msrb.mxu1 %v653_v6  ;;  %288 = vmatpush.bf16.msrb.mxu0 %v663_v8 }
  0x3a   :  { %319 = vmatpush.bf16.msra.mxu3 %v646_v5 }
  0x3d   :  { %253 = vmatpush.bf16.msrb.mxu1 %v658_v7  ;;  %289 = vmatpush.bf16.msrb.mxu0 %v668_v9 }
  0x3e   :  { %320 = vmatpush.bf16.msra.mxu3 %v653_v6 }
  0x41   :  { %254 = vmatpush.bf16.msrb.mxu1 %v663_v8  ;;  %290 = vmatpush.bf16.msrb.mxu0 %v673_v10 }
  0x42   :  { %321 = vmatpush.bf16.msra.mxu3 %v658_v7 }
  0x45   :  { %255 = vmatpush.bf16.msrb.mxu1 %v668_v9  ;;  %378 = vmatpush.bf16.msra.mxu0 %v635_v3 }
  0x46   :  { %322 = vmatpush.bf16.msra.mxu3 %v663_v8 }
  0x49   :  { %256 = vmatpush.bf16.msrb.mxu1 %v673_v10 }
  0x4a   :  { %323 = vmatpush.bf16.msra.mxu3 %v668_v9 }
  0x4d   :  { %351 = vmatpush.bf16.msra.mxu1 %v627_v0 }
  0x4e   :  { %324 = vmatpush.bf16.msra.mxu3 %v673_v10 }
  0x51   :  { %352 = vmatpush.bf16.msra.mxu1 %v633_v2 }
  0x55   :  { %353 = vmatpush.bf16.msra.mxu1 %v646_v5 }
  0x59   :  { %354 = vmatpush.bf16.msra.mxu1 %v653_v6 }
  0x5d   :  { %355 = vmatpush.bf16.msra.mxu1 %v658_v7 }
  0x61   :  { %356 = vmatpush.bf16.msra.mxu1 %v663_v8 }
  0x65   :  { %357 = vmatpush.bf16.msra.mxu1 %v668_v9 }
  0x69   :  { %358 = vmatpush.bf16.msra.mxu1 %v673_v10 }
  0x91   :  { %v210_v31 = vpop.f32.mrf.mxu0 }
  0x92   :  { %v211_v35 = vadd.f32 %v712_v15, %v210_v31 }
  0x94   :  { %v95_v13 = vpop.f32.mrf.mxu3 }
  0x95   :  { %v96_v16 = vadd.f32 %v712_v15, %v95_v13 }
  0x96   :  { %v176_v22 = vpop.f32.mrf.mxu2 }
  0x97   :  { %v177_v25 = vadd.f32 %v712_v15, %v176_v22  ;;  %v406_v22 = vld [vmem:[#allocation4 + $0x30] sm:$0xff] }
  0x99   :  { %v212_v32 = vpop.f32.mrf.mxu0 }
  0x9c   :  { %v97_v14 = vpop.f32.mrf.mxu3 }
  0x9e   :  { %v178_v23 = vpop.f32.mrf.mxu2 }
  0x9f   :  { %v405_v23 = vld [vmem:[#allocation4 + $0x28] sm:$0xff] }
  0xa1   :  { %v244_v41 = vpop.f32.mrf.mxu0 }
  0xa2   :  { %v245_v45 = vadd.f32 %v712_v15, %v244_v41 }
  0xa9   :  { %v156_v17 = vpop.f32.mrf.mxu1  ;;  %v246_v42 = vpop.f32.mrf.mxu0 }
  0xaa   :  { %v160_v18 = vadd.f32 %v156_v17, %v96_v16 }
  0xac   :  { %511 = vtanh.f32 %v160_v18 }
  0xb1   :  { %v158_v19 = vpop.f32.mrf.mxu1  ;;  %v278_v43 = vpop.f32.mrf.mxu0 }
  0xb2   :  { %v512_v20 = vpop.eup %511  ;;  %v279_v52 = vadd.f32 %v712_v15, %v278_v43  ;;  %v409_v19 = vld [vmem:[#allocation4 + $0x48] sm:$0xff] }
  0xb3   :  { %v180_v21 = vpack.c.bf16 %v512_v20, %v512_v20  ;;  %v408_v20 = vld [vmem:[#allocation4 + $0x40] sm:$0xff] }
  0xb5   :  { %189 = vmatmul.bf16.vlgmr.msrb.gmra.mxu3 %v180_v21  ;;  %v407_v21 = vld [vmem:[#allocation4 + $0x38] sm:$0xff] }
  0xb9   :  { %v280_v44 = vpop.f32.mrf.mxu0 }
 0x138   :  { %v190_v26 = vpop.f32.mrf.mxu3 }
 0x139   :  { %v194_v27 = vadd.f32 %v190_v26, %v177_v25  ;;  %v404_v26 = vld [vmem:[#allocation4 + $0x20] sm:$0xff] }
 0x13b   :  { %513 = vtanh.f32 %v194_v27  ;;  %v403_v27 = vld [vmem:[#allocation4 + $0x18] sm:$0xff] }
 0x140   :  { %v192_v28 = vpop.f32.mrf.mxu3 }
 0x141   :  { %v514_v29 = vpop.eup %513  ;;  %v402_v28 = vld [vmem:[#allocation4 + $0x10] sm:$0xff] }
 0x142   :  { %v214_v30 = vpack.c.bf16 %v514_v29, %v514_v29  ;;  %v401_v29 = vld [vmem:[#allocation4 + $0x8] sm:$0xff] }
 0x144   :  { %223 = vmatmul.bf16.vlgmr.msrb.gmra.mxu2 %v214_v30  ;;  %v400_v30 = vld [vmem:[#allocation4] sm:$0xff] }
 0x145   :  { %344 = vmatpush.bf16.msrb.mxu2 %v635_v3 }
 0x154   :  { %489 = vmatmul.msk.bf16.vlgmr.msra.gmra.mxu2 %vm78_vm1, %v488_v51 }
 0x155   :  { %385 = vmatpush.bf16.msra.mxu2 %v627_v0 }
 0x159   :  { %386 = vmatpush.bf16.msra.mxu2 %v633_v2 }
 0x15d   :  { %387 = vmatpush.bf16.msra.mxu2 %v646_v5  ;;  %v492_v5 = vld [vmem:[%s771_s0 + $0x7] sm:$0x1] }
 0x161   :  { %388 = vmatpush.bf16.msra.mxu2 %v653_v6  ;;  %v415_v6 = vld [vmem:[#allocation4 + $0x78] sm:$0xff] }
 0x162   :  { %420 = vmatpush.msrb.mxu3 %v415_v6 }
 0x164   :  { %491 = vmatmul.msk.bf16.vlgmr.msrb.gmra.mxu2 %vm78_vm1, %v490_v58 }
 0x165   :  { %389 = vmatpush.bf16.msra.mxu2 %v658_v7  ;;  %v414_v7 = vld [vmem:[#allocation4 + $0x70] sm:$0xff] }
 0x166   :  { %421 = vmatpush.msrb.mxu3 %v414_v7 }
 0x169   :  { %390 = vmatpush.bf16.msra.mxu2 %v663_v8  ;;  %v413_v8 = vld [vmem:[#allocation4 + $0x68] sm:$0xff] }
 0x16a   :  { %422 = vmatpush.msrb.mxu3 %v413_v8 }
 0x16d   :  { %391 = vmatpush.bf16.msra.mxu2 %v668_v9  ;;  %v412_v9 = vld [vmem:[#allocation4 + $0x60] sm:$0xff] }
 0x16e   :  { %423 = vmatpush.msrb.mxu3 %v412_v9 }
 0x171   :  { %392 = vmatpush.bf16.msra.mxu2 %v673_v10  ;;  %v411_v10 = vld [vmem:[#allocation4 + $0x58] sm:$0xff] }
 0x172   :  { %424 = vmatpush.msrb.mxu3 %v411_v10 }
 0x174   :  { %425 = vmatpush.msrb.mxu3 %v410_v11 }
 0x176   :  { %426 = vmatpush.msrb.mxu3 %v409_v19 }
 0x178   :  { %427 = vmatpush.msrb.mxu3 %v408_v20 }
 0x17a   :  { %428 = vmatpush.msrb.mxu3 %v407_v21 }
 0x17c   :  { %429 = vmatpush.msrb.mxu3 %v406_v22 }
 0x17e   :  { %430 = vmatpush.msrb.mxu3 %v405_v23 }
 0x180   :  { %431 = vmatpush.msrb.mxu3 %v404_v26 }
 0x182   :  { %432 = vmatpush.msrb.mxu3 %v403_v27 }
 0x184   :  { %433 = vmatpush.msrb.mxu3 %v402_v28 }
 0x186   :  { %434 = vmatpush.msrb.mxu3 %v401_v29 }
 0x188   :  { %435 = vmatpush.msrb.mxu3 %v400_v30 }
 0x1c7   :  { %v224_v36 = vpop.f32.mrf.mxu2 }
 0x1c8   :  { %v228_v37 = vadd.f32 %v224_v36, %v211_v35  ;;  %v510_v36 = vld [vmem:[%s776_s5] ss:$0 sm:$0xff] }
 0x1ca   :  { %515 = vtanh.f32 %v228_v37 }
 0x1cf   :  { %v226_v38 = vpop.f32.mrf.mxu2 }
 0x1d0   :  { %v516_v39 = vpop.eup %515 }
 0x1d1   :  { %v248_v40 = vpack.c.bf16 %v516_v39, %v516_v39 }
 0x1d3   :  { %257 = vmatmul.bf16.vlgmr.msrb.gmra.mxu1 %v248_v40 }
 0x1d7   :  { %v312_v59 = vpop.f32.mrf.mxu2 }
 0x1d8   :  { %v313_v61 = vadd.f32 %v712_v15, %v312_v59 }
 0x1df   :  { %v314_v60 = vpop.f32.mrf.mxu2 }
 0x1e7   :  { %v346_v3 = vpop.f32.mrf.mxu2 }
 0x1e8   :  { %v347_v12 = vadd.f32 %v712_v15, %v346_v3 }
 0x1ef   :  { %v348_v4 = vpop.f32.mrf.mxu2 }
 0x250   :  { %v258_v46 = vpop.f32.mrf.mxu1 }
 0x251   :  { %v262_v47 = vadd.f32 %v258_v46, %v245_v45 }
 0x253   :  { %517 = vtanh.f32 %v262_v47 }
 0x258   :  { %v260_v48 = vpop.f32.mrf.mxu1 }
 0x259   :  { %v518_v49 = vpop.eup %517 }
 0x25a   :  { %v282_v50 = vpack.c.bf16 %v518_v49, %v518_v49 }
 0x25c   :  { %291 = vmatmul.bf16.vlgmr.msrb.gmra.mxu0 %v282_v50 }
 0x26c   :  { %493 = vmatmul.msk.bf16.vlgmr.msra.gmra.mxu0 %vm78_vm1, %v492_v5 }
 0x2d9   :  { %v292_v53 = vpop.f32.mrf.mxu0 }
 0x2da   :  { %v296_v54 = vadd.f32 %v292_v53, %v279_v52 }
 0x2dc   :  { %519 = vtanh.f32 %v296_v54 }
 0x2e1   :  { %v294_v55 = vpop.f32.mrf.mxu0 }
 0x2e2   :  { %v520_v56 = vpop.eup %519 }
 0x2e3   :  { %v316_v57 = vpack.c.bf16 %v520_v56, %v520_v56 }
 0x2e5   :  { %325 = vmatmul.bf16.vlgmr.msra.gmra.mxu3 %v316_v57 }
 0x2e9   :  { %v380_v24 = vpop.f32.mrf.mxu0 }
 0x2ea   :  { %v381_v31 = vadd.f32 %v712_v15, %v380_v24 }
 0x2f1   :  { %v382_v25 = vpop.f32.mrf.mxu0 }
 0x368   :  { %v326_v62 = vpop.f32.mrf.mxu3 }
 0x369   :  { %v330_v63 = vadd.f32 %v326_v62, %v313_v61 }
 0x36b   :  { %521 = vtanh.f32 %v330_v63 }
 0x370   :  { %v328_v0 = vpop.f32.mrf.mxu3 }
 0x371   :  { %v522_v1 = vpop.eup %521 }
 0x372   :  { %v350_v2 = vpack.c.bf16 %v522_v1, %v522_v1 }
 0x374   :  { %359 = vmatmul.bf16.vlgmr.msra.gmra.mxu1 %v350_v2 }
 0x3f1   :  { %v360_v13 = vpop.f32.mrf.mxu1 }
 0x3f2   :  { %v364_v14 = vadd.f32 %v360_v13, %v347_v12 }
 0x3f4   :  { %523 = vtanh.f32 %v364_v14 }
 0x3f9   :  { %v362_v16 = vpop.f32.mrf.mxu1 }
 0x3fa   :  { %v524_v17 = vpop.eup %523 }
 0x3fb   :  { %v384_v18 = vpack.c.bf16 %v524_v17, %v524_v17 }
 0x3fd   :  { %393 = vmatmul.bf16.vlgmr.msra.gmra.mxu2 %v384_v18 }
 0x480   :  { %v394_v32 = vpop.f32.mrf.mxu2 }
 0x481   :  { %v398_v33 = vadd.f32 %v394_v32, %v381_v31 }
 0x483   :  { %525 = vtanh.f32 %v398_v33 }
 0x488   :  { %v396_v34 = vpop.f32.mrf.mxu2 }
 0x489   :  { %v526_v35 = vpop.eup %525 }
 0x48a   :  { %436 = vmatmul.f32.vlgmr.msrb.gmra.mxu3 %v526_v35 }
 0x50d   :  { %v437_v37 = vpop.f32.mrf.mxu3 }
 0x50e   :  { %v438_v38 = vadd.f32 %v510_v36, %v437_v37 }
 0x510   :  { %440 = vst [vmem:[%s777_s6] sm:$0x3] %v438_v38 }
 0x511   :  { %445 = vsyncpa [#allocation3], 1 }
 0x512   :  { %446 = vsyncpa [#allocation5], 1 }

</bundles_post_ra>
